<compile_context>
chip_gen: v7x
topology: tpu7x:2x2x1
jax: 0.10.0
libtpu: 0.0.40
codegen_flags: <defaults>
</compile_context>

<pallas_src>
import jax
import jax.numpy as jnp
from jax.experimental import pallas as pl
from jax.experimental.pallas import tpu as pltpu

MIN_VALUE = 0.6381
C_IN = 3
C_OUT = 17


def _convt1x1_clamp_kernel(x_ref, w_ref, b_ref, o_ref):
    # x_ref: (BN, C_IN, TM)   w_ref: (C_OUT, C_IN)   b_ref: (C_OUT, 1)
    # o_ref: (BN, C_OUT, TM)
    wv = w_ref[...]                      # loop-invariant, read once per step
    bv = b_ref[...]
    for bi in range(x_ref.shape[0]):     # static unroll over folded batch items
        # (C_OUT, C_IN) @ (C_IN, TM) -> (C_OUT, TM) on the MXU; lane-dense out.
        acc = jnp.dot(wv, x_ref[bi],
                      preferred_element_type=jnp.float32,
                      precision=jax.lax.Precision.HIGHEST)
        o_ref[bi] = jnp.maximum(acc + bv, MIN_VALUE).astype(o_ref.dtype)


def _plan_tiles(n, m, *, max_tile=32768, min_tile=2048, max_fold=16):
    """Pick (batch_fold BN, spatial tile TM).  Never introduces padding: ragged
    last spatial blocks are masked by Pallas on writeback."""
    max_tile = max(128, (max_tile // 128) * 128)

    # --- spatial tile ---
    if m <= max_tile:
        tile_m = m                              # one full-extent block (any m)
    else:
        tile_m = 0
        t = max_tile
        while t >= min_tile:                    # exact divisor, but never tiny
            if m % t == 0:
                tile_m = t
                break
            t -= 128
        if tile_m == 0:                         # awkward m: ragged last block
            tile_m = max_tile

    # --- fold small batches into one grid step (amortize ~0.35us/step) ---
    bn = 1
    if tile_m == m:
        cap = max(1, max_tile // max(m, 1))
        for cand in range(min(n, cap, max_fold), 0, -1):
            if n % cand == 0:                   # keep batch blocks exact
                bn = cand
                break

    # --- megacore: ensure >=2 parallel blocks (v7x has 2 TensorCores) ---
    if (n // bn) == 1 and pl.cdiv(m, tile_m) == 1 and m >= 256:
        tile_m = ((m + 1) // 2 + 127) // 128 * 128   # ~m/2, lane-aligned

    return bn, tile_m


def conv_transpose_1x1_clamp(x_nchw, weight, bias, *, max_tile=32768,
                             out_dtype=None):
    """x_nchw: (N, 3, H, W); weight: (3, 17, 1, 1) or (3, 17); bias: (17,).

    out_dtype=None keeps the input dtype (exact parity with the PyTorch
    module); pass jnp.bfloat16 to halve the dominant output store traffic on
    v5e/v6e if the consumer tolerates reduced precision.
    """
    n, c, h, w = x_nchw.shape
    assert c == C_IN
    m = h * w
    out_dtype = x_nchw.dtype if out_dtype is None else out_dtype

    x3d = x_nchw.reshape(n, C_IN, m)            # free reshape, stays NCHW
    w2d = jnp.asarray(weight, jnp.float32).reshape(C_IN, C_OUT).T  # (C_OUT,C_IN)
    b2d = jnp.asarray(bias, jnp.float32).reshape(C_OUT, 1)

    bn, tile_m = _plan_tiles(n, m, max_tile=max_tile)
    grid = (n // bn, pl.cdiv(m, tile_m))

    cost = pl.CostEstimate(
        flops=(2 * C_IN + 2) * C_OUT * n * m,
        transcendentals=0,
        bytes_accessed=(C_IN * x3d.dtype.itemsize
                        + C_OUT * jnp.dtype(out_dtype).itemsize) * n * m,
    )

    out3d = pl.pallas_call(
        _convt1x1_clamp_kernel,
        out_shape=jax.ShapeDtypeStruct((n, C_OUT, m), out_dtype),
        grid_spec=pltpu.PrefetchScalarGridSpec(
            num_scalar_prefetch=0,
            grid=grid,
            in_specs=[
                pl.BlockSpec((bn, C_IN, tile_m), lambda ni, mi: (ni, 0, mi)),
                pl.BlockSpec((C_OUT, C_IN), lambda ni, mi: (0, 0)),
                pl.BlockSpec((C_OUT, 1), lambda ni, mi: (0, 0)),
            ],
            out_specs=pl.BlockSpec((bn, C_OUT, tile_m),
                                   lambda ni, mi: (ni, 0, mi)),
        ),
        compiler_params=pltpu.CompilerParams(
            dimension_semantics=("parallel", "parallel"),
        ),
        cost_estimate=cost,
    )(x3d, w2d, b2d)

    # (N, C_OUT, H*W) -> (N, C_OUT, H, W): free reshape, already NCHW.
    return out3d.reshape(n, C_OUT, h, w)


if __name__ == "__main__":
    key = jax.random.PRNGKey(0)
    kx, kw, kb = jax.random.split(key, 3)

    # PyTorch-style init for ConvTranspose2d(3, 17, 1): weight (C_in, C_out, 1, 1)
    # and bias drawn from uniform(-b, b) with b = 1/sqrt(C_in * kH * kW).
    bound = 1.0 / (C_IN ** 0.5)
    weight = jax.random.uniform(kw, (C_IN, C_OUT, 1, 1), jnp.float32, -bound, bound)
    bias = jax.random.uniform(kb, (C_OUT,), jnp.float32, -bound, bound)
    w2 = weight.reshape(C_IN, C_OUT)

    def reference(x):
        # Exact f32 elementwise reference (no matmul lowering involved).
        ref = sum(x[:, ci:ci + 1, :, :] * w2[ci].reshape(1, C_OUT, 1, 1)
                  for ci in range(C_IN))
        ref = ref + bias.reshape(1, C_OUT, 1, 1)
        return jnp.maximum(ref, MIN_VALUE)

    # Small shapes consistent with the module (in_channels fixed at 3), plus the
    # module's own (1, 3, 128, 128) input.  The (1, 3, 20, 24) case exercises
    # the ragged (masked) last spatial block; (2, 3, 16, 16) exercises batch
    # folding + the two-way megacore split.
    shapes = [(2, C_IN, 16, 16), (1, C_IN, 20, 24), (1, C_IN, 128, 128)]
    for i, shape in enumerate(shapes):
        xi = jax.random.normal(jax.random.fold_in(kx, i), shape, dtype=jnp.float32)
        out = jax.block_until_ready(conv_transpose_1x1_clamp(xi, weight, bias))
        ref = reference(xi)
        assert out.shape == (shape[0], C_OUT, shape[2], shape[3])
        assert jnp.allclose(out, ref, atol=1e-4, rtol=1e-4), (
            shape, float(jnp.max(jnp.abs(out - ref))))

    # Optional low-precision output path (v5e/v6e store-traffic saver).
    x_big = jax.random.normal(jax.random.fold_in(kx, 99), (1, C_IN, 128, 128),
                              dtype=jnp.float32)
    out_bf16 = jax.block_until_ready(
        conv_transpose_1x1_clamp(x_big, weight, bias, out_dtype=jnp.bfloat16))
    assert out_bf16.dtype == jnp.bfloat16
    assert jnp.allclose(out_bf16.astype(jnp.float32), reference(x_big),
                        atol=3e-2, rtol=2e-2)

    print("KERNEL_OK")
</pallas_src>

<mosaic_0001>
module attributes {stable_mosaic.version = 11 : i64} {
  func.func @_convt1x1_clamp_kernel(%arg0: i32, %arg1: i32, %arg2: memref<2x3x128xf32, #tpu.memory_space<vmem>>, %arg3: memref<17x3xf32, #tpu.memory_space<vmem>>, %arg4: memref<17x1xf32, #tpu.memory_space<vmem>>, %arg5: memref<2x17x128xf32, #tpu.memory_space<vmem>>) attributes {dimension_semantics = [#tpu.dimension_semantics<parallel>, #tpu.dimension_semantics<parallel>], iteration_bounds = array<i64: 1, 2>, scalar_prefetch = 0 : i64, scratch_operands = 0 : i64, tpu.core_type = #tpu.core_type<tc>, window_params = [{transform_indices = @transform_0, window_bounds = array<i64: 2, 3, 128>}, {pipeline_mode = #tpu.pipeline_mode<synchronous>, transform_indices = @transform_1, window_bounds = array<i64: 17, 3>}, {pipeline_mode = #tpu.pipeline_mode<synchronous>, transform_indices = @transform_2, window_bounds = array<i64: 17, 1>}, {transform_indices = @transform_3, window_bounds = array<i64: 2, 17, 128>}]} {
    %c0 = arith.constant 0 : index
    %c0_0 = arith.constant 0 : index
    %0 = vector.load %arg3[%c0, %c0_0] : memref<17x3xf32, #tpu.memory_space<vmem>>, vector<17x3xf32>
    %c0_1 = arith.constant 0 : index
    %c0_2 = arith.constant 0 : index
    %1 = vector.load %arg4[%c0_1, %c0_2] : memref<17x1xf32, #tpu.memory_space<vmem>>, vector<17x1xf32>
    %c0_3 = arith.constant 0 : index
    %c0_4 = arith.constant 0 : index
    %c0_5 = arith.constant 0 : index
    %2 = vector.load %arg2[%c0_3, %c0_4, %c0_5] : memref<2x3x128xf32, #tpu.memory_space<vmem>>, vector<1x3x128xf32>
    %3 = vector.shape_cast %2 : vector<1x3x128xf32> to vector<3x128xf32>
    %cst = arith.constant dense<0.000000e+00> : vector<17x128xf32>
    %4 = tpu.matmul %0, %3, %cst {dimension_numbers = #tpu.dot_dimension_numbers<[1], [0], [0], [1], [0, 0, 1, 1], [], []>, precision = #tpu.contract_precision<fp32>} : vector<17x3xf32>, vector<3x128xf32>, vector<17x128xf32> -> vector<17x128xf32>
    %5 = vector.broadcast %1 : vector<17x1xf32> to vector<17x128xf32>
    %6 = arith.addf %4, %5 : vector<17x128xf32>
    %cst_6 = arith.constant 6.381000e-01 : f32
    %7 = vector.broadcast %cst_6 : f32 to vector<17x128xf32>
    %8 = arith.maximumf %6, %7 : vector<17x128xf32>
    %c0_7 = arith.constant 0 : index
    %c0_8 = arith.constant 0 : index
    %c0_9 = arith.constant 0 : index
    %9 = vector.load %arg5[%c0_7, %c0_8, %c0_9] : memref<2x17x128xf32, #tpu.memory_space<vmem>>, vector<1x17x128xf32>
    %10 = vector.shape_cast %9 : vector<1x17x128xf32> to vector<17x128xf32>
    %11 = vector.shape_cast %8 : vector<17x128xf32> to vector<1x17x128xf32>
    tpu.vector_store %arg5[%c0_7, %c0_8, %c0_9], %11 {strides = array<i32>} : memref<2x17x128xf32, #tpu.memory_space<vmem>>, vector<1x17x128xf32>,
    %c1 = arith.constant 1 : index
    %c0_10 = arith.constant 0 : index
    %c0_11 = arith.constant 0 : index
    %12 = vector.load %arg2[%c1, %c0_10, %c0_11] : memref<2x3x128xf32, #tpu.memory_space<vmem>>, vector<1x3x128xf32>
    %13 = vector.shape_cast %12 : vector<1x3x128xf32> to vector<3x128xf32>
    %cst_12 = arith.constant dense<0.000000e+00> : vector<17x128xf32>
    %14 = tpu.matmul %0, %13, %cst_12 {dimension_numbers = #tpu.dot_dimension_numbers<[1], [0], [0], [1], [0, 0, 1, 1], [], []>, precision = #tpu.contract_precision<fp32>} : vector<17x3xf32>, vector<3x128xf32>, vector<17x128xf32> -> vector<17x128xf32>
    %15 = vector.broadcast %1 : vector<17x1xf32> to vector<17x128xf32>
    %16 = arith.addf %14, %15 : vector<17x128xf32>
    %cst_13 = arith.constant 6.381000e-01 : f32
    %17 = vector.broadcast %cst_13 : f32 to vector<17x128xf32>
    %18 = arith.maximumf %16, %17 : vector<17x128xf32>
    %c1_14 = arith.constant 1 : index
    %c0_15 = arith.constant 0 : index
    %c0_16 = arith.constant 0 : index
    %19 = vector.load %arg5[%c1_14, %c0_15, %c0_16] : memref<2x17x128xf32, #tpu.memory_space<vmem>>, vector<1x17x128xf32>
    %20 = vector.shape_cast %19 : vector<1x17x128xf32> to vector<17x128xf32>
    %21 = vector.shape_cast %18 : vector<17x128xf32> to vector<1x17x128xf32>
    tpu.vector_store %arg5[%c1_14, %c0_15, %c0_16], %21 {strides = array<i32>} : memref<2x17x128xf32, #tpu.memory_space<vmem>>, vector<1x17x128xf32>,
    return
  }
  func.func @transform_0(%arg0: i32, %arg1: i32) -> (i32, i32, i32) {
    %c0_i32 = arith.constant 0 : i32
    %c0_i32_0 = arith.constant 0 : i32
    return %arg0, %c0_i32, %arg1 : i32, i32, i32
  }
  func.func @transform_1(%arg0: i32, %arg1: i32) -> (i32, i32) {
    %c0_i32 = arith.constant 0 : i32
    %c0_i32_0 = arith.constant 0 : i32
    %c0_i32_1 = arith.constant 0 : i32
    return %c0_i32, %c0_i32_0 : i32, i32
  }
  func.func @transform_2(%arg0: i32, %arg1: i32) -> (i32, i32) {
    %c0_i32 = arith.constant 0 : i32
    %c0_i32_0 = arith.constant 0 : i32
    %c0_i32_1 = arith.constant 0 : i32
    return %c0_i32, %c0_i32_0 : i32, i32
  }
  func.func @transform_3(%arg0: i32, %arg1: i32) -> (i32, i32, i32) {
    %c0_i32 = arith.constant 0 : i32
    %c0_i32_0 = arith.constant 0 : i32
    return %arg0, %c0_i32, %arg1 : i32, i32, i32
  }
}

</mosaic_0001>

<bundles_post_ra>
// kernel: tpu_custom_call.1
= control target key start
LH: loop header
LB: loop body
LE: loop exit
PB: predicated region body
PF: predicated region fallthrough
CT: control target
= control target key end

     0   :  { %s1852_s12 = smov 0   ;;  %s1854_s13 = smov 0   ;;  %s2122_s0 = inlined_call_operand.vmem [shape: f32[2,3,256], index: 0, kind: input, shape index: {}]   ;;  %s2123_s1 = inlined_call_operand.vmem [shape: f32[17,3], index: 1, kind: input, shape index: {}]   ;;  %s2124_s2 = inlined_call_operand.vmem [shape: f32[17,1], index: 2, kind: input, shape index: {}]   ;;  %s2125_s3 = inlined_call_operand.vmem [shape: f32[2,17,256], index: 3, kind: output, shape index: {}]  }
   0x1   :  { %s1856_s14 = smov 0   ;;  %s1858_s15 = smov 0  }
   0x2   :  { %s1860_s16 = smov 0  }
   0x3 LB: > { %s22_s17 = sadd.s32 1, %s1823_s15  ;;  %s1482_s18 = sadd.s32 4294967295, %s1827_s16   ;;  %s1827_s16 = sphi %s1860_s16, %s13_s16   ;;  %s1823_s15 = sphi %s1858_s15, %s2130_s15   ;;  %s1819_s14 = sphi %s1856_s14, %s2129_s14   ;;  %s1815_s13 = sphi %s1854_s13, %s2128_s13   ;;  %s1811_s12 = sphi %s1852_s12, %s2127_s12  }
   0x4   : > { %p23_p0 = scmp.ge.s32.totalorder %s22_s17, 2  ;;  %p41_p1 = scmp.ne.s32.totalorder %s1815_s13, %s1811_s12 }
   0x5   : > { %p42_p2 = scmp.eq.s32.totalorder %s1827_s16, 0  ;;  %p115_p4 = scmp.eq.s32.totalorder %s1482_s18, 1 }
   0x6   : > { %s2132_s17 = smov (%p23_p0, %s22_s17), 0  ;;  %s34_s20 = sadd.s32 1, %s1815_s13 }
   0x7   : > { %p43_p3 = por %p42_p2, %p41_p1  ;;  %s30_s19 = ssub.s32 %s1823_s15, %s2132_s17 }
   0x8   : > { %p32_p5 = scmp.eq.s32.totalorder %s30_s19, 0  ;;  %p1887_p6 = por %p115_p4, %p41_p1 }
   0x9   : > { %p1485_p7 = scmp.ge.s32.totalorder %s1827_s16, 2 }
   0xa   : > { %s1892_s22 = scalar_select %p32_p5, %s1815_s13, %s34_s20  }
   0xb   : > { %143 = sbr.rel (%p1485_p7) target bundleno = 25 (0x19), region = 24 }
  0x12   : > { %146 = sbr.rel (!%p43_p3) target bundleno = 25 (0x19), region = 28  ;;  %s148_s23 = sand.u32 (%p43_p3), 1, %s1815_s13  }
  0x13   : > { %s1487_s24 = sshll.u32 (%p43_p3), %s1823_s15, 2  ;;  %s1486_s25 = sshll.u32 (%p43_p3), %s148_s23, 3 }
  0x14   : > { %s155_s28 = scalar_lea.vmem (%p43_p3), %s2122_s0, %s1487_s24  ;;  %s150_s29 = scalar_lea.vmem (%p43_p3), [#allocation2], %s1486_s25 }
  0x15   : > { %v171_v0 = vld [vmem:[%s155_s28] sm:$0xf] (%p43_p3)  ;;  %v173_v1 = vld [vmem:[%s155_s28 + $0x8] sm:$0xf] (%p43_p3) }
  0x16   : > { %172 = vst [vmem:[%s150_s29] sm:$0xf] (%p43_p3), %v171_v0  ;;  %174 = vst [vmem:[%s150_s29 + $0x4] sm:$0xf] (%p43_p3), %v173_v1 }
  0x19 PF: > { %p1488_p8 = scmp.ge.s32.totalorder %s1827_s16, 1  ;;  %p200_p9 = scmp.lt.s32.totalorder %s1827_s16, 3 }
  0x1b   : > { %p201_p10 = pnand %p1488_p8, %p200_p9 }
  0x1c   : > { %s207_s30 = sand.u32 (!%p201_p10), 1, %s1811_s12   ;;  %vm263_vm0 = vcmask (!%p201_p10), 1042432   ;;  %v231_v2 = vld [vmem:[%s2123_s1] sm:$0xff] (!%p201_p10)  ;;  %vm253_vm1 = vcmask (!%p201_p10), 23552   ;;  %v1829_v3 = vmov (!%p201_p10), 0.0   ;;  %v232_v5 = vld [vmem:[%s2123_s1 + $0x8] sm:$0xff] (!%p201_p10) }
  0x1d   : > { %204 = sbr.rel (%p201_p10) target bundleno = 333 (0x14d), region = 69  ;;  %1545 = vmatprep.subr.mxu0 (!%p201_p10), %v1829_v3  ;;  %1611 = vmatprep.subr.mxu1 (!%p201_p10), %v1829_v3  ;;  %s1489_s6 = sshll.u32 (!%p201_p10), %s207_s30, 3  ;;  %v255_v4 = vsel (!%p201_p10), %vm253_vm1, %v231_v2, 0  ;;  %v233_v6 = vld [vmem:[%s2123_s1 + $0x10] sm:$0x1] (!%p201_p10)  ;;  %vm1830_vm2 = vmmov (!%p201_p10), 0  }
  0x1e   : > { %1547 = vmatprep.mubr.msk.f32.mxu0 (!%p201_p10), %vm1830_vm2, %v1829_v3  ;;  %1613 = vmatprep.mubr.msk.f32.mxu1 (!%p201_p10), %vm1830_vm2, %v1829_v3  ;;  %v1920_v7 = vand.u32 (!%p201_p10), 4294901760, %v255_v4  ;;  %v258_v8 = vsel (!%p201_p10), %vm253_vm1, %v232_v5, 0  ;;  %v261_v9 = vsel (!%p201_p10), %vm253_vm1, %v233_v6, 0  ;;  %v234_v10 = vld [vmem:[%s2124_s2] sm:$0xff] (!%p201_p10)  ;;  %s209_s19 = scalar_lea.vmem (!%p201_p10), [#allocation2], %s1489_s6  ;;  %v1831_v15 = vmov (!%p201_p10), 0  }
  0x1f   : > { %v237_v11 = vld [vmem:[%s209_s19] sm:$0x7] (!%p201_p10)  ;;  %v1490_v12 = vld [vmem:[%s209_s19 + $0x4] sm:$0x7] (!%p201_p10)  ;;  %v1925_v13 = vand.u32 (!%p201_p10), 4294901760, %v258_v8  ;;  %v1927_v14 = vand.u32 (!%p201_p10), 4294901760, %v261_v9  ;;  %1787 = vset.pattern.permute.xlu0 (!%p201_p10), %v1831_v15  ;;  %1788 = vset.pattern.permute.xlu1 (!%p201_p10), %v1831_v15 }
  0x20   : > { %v265_v16 = vsel (!%p201_p10), %vm263_vm0, %v237_v11, 0  ;;  %v808_v17 = vsel (!%p201_p10), %vm263_vm0, %v1490_v12, 0  ;;  %v1932_v18 = vsub.f32 (!%p201_p10), %v255_v4, %v1920_v7  ;;  %240 = vperm.xlu0 (!%p201_p10), %1787, %v234_v10   ;;  %v236_v19 = vld [vmem:[%s2124_s2 + $0x10] sm:$0x1] (!%p201_p10)  ;;  %v235_v25 = vld [vmem:[%s2124_s2 + $0x8] sm:$0xff] (!%p201_p10)  ;;  %s1743_s26 = smul.u32 (!%p201_p10), 48, %s207_s30 }
  0x21   : > { %v1937_v20 = vand.u32 (!%p201_p10), 4294901760, %v265_v16  ;;  %v1939_v21 = vand.u32 (!%p201_p10), 4294901760, %v808_v17  ;;  %v1942_v22 = vsub.f32 (!%p201_p10), %v258_v8, %v1925_v13  ;;  %v1945_v23 = vsub.f32 (!%p201_p10), %v261_v9, %v1927_v14  ;;  %250 = vperm.xlu1 (!%p201_p10), %1788, %v236_v19  }
  0x22   : > { %v1948_v24 = vand.u32 (!%p201_p10), 4294901760, %v1932_v18  ;;  %s228_s27 = scalar_lea.vmem (!%p201_p10), [#allocation3], %s1743_s26 }
  0x23   : > { %1546 = vmatpush3.msra.mxu0 (!%p201_p10), %v1937_v20  ;;  %v1955_v26 = vsub.f32 (!%p201_p10), %v265_v16, %v1937_v20  ;;  %1612 = vmatpush3.msra.mxu1 (!%p201_p10), %v1939_v21  ;;  %v1959_v27 = vsub.f32 (!%p201_p10), %v808_v17, %v1939_v21  ;;  %v1962_v28 = vand.u32 (!%p201_p10), 4294901760, %v1942_v22  ;;  %v1969_v30 = vand.u32 (!%p201_p10), 4294901760, %v1945_v23 }
  0x24   : > { %v336_v29 = vsub.f32 %v1932_v18, %v1948_v24  ;;  %1556 = vmatprep.subr.mxu0 %v1829_v3  ;;  %1622 = vmatprep.subr.mxu1 %v1829_v3  ;;  %s1494_s12 = sshll.u32 (%p1887_p6), %s1819_s14, 3 }
  0x25   : > { %v366_v31 = vand.u32 4294901760, %v1955_v26  ;;  %v909_v32 = vand.u32 4294901760, %v1959_v27  ;;  %v346_v33 = vsub.f32 %v1942_v22, %v1962_v28  ;;  %245 = vperm.xlu0 %1787, %v235_v25   ;;  %v356_v38 = vsub.f32 %v1945_v23, %v1969_v30  ;;  %s1360_s30 = scalar_lea.vmem (%p1887_p6), %s2125_s3, %s1494_s12 }
  0x26   : > { %v337_v34 = vand.u32 4294901760, %v336_v29 }
  0x27   : > { %v367_v35 = vsub.f32 %v1955_v26, %v366_v31  ;;  %v910_v36 = vsub.f32 %v1959_v27, %v909_v32  ;;  %v347_v37 = vand.u32 4294901760, %v346_v33  ;;  %v357_v41 = vand.u32 4294901760, %v356_v38 }
  0x28   : > { %1548 = vmatmul.mubr.f32.vlgmr.msra.gmra.mrb[0].mxu0 %v337_v34  ;;  %1614 = vmatmul.mubr.f32.vlgmr.msra.gmra.mrb[0].mxu1 %v337_v34 }
  0x29   : > { %1550 = vmatprep.mubr.msk.f32.mxu0 %vm1830_vm2, %v1829_v3  ;;  %v368_v39 = vand.u32 4294901760, %v367_v35  ;;  %1616 = vmatprep.mubr.msk.f32.mxu1 %vm1830_vm2, %v1829_v3  ;;  %v911_v40 = vand.u32 4294901760, %v910_v36 }
  0x2b   : > { %1557 = vmatpush3.msra.mxu0 %v368_v39  ;;  %1623 = vmatpush3.msra.mxu1 %v911_v40 }
  0x2c   : > { %1551 = vmatmul.mubr.f32.gmra.mrb[2].mxu0 %v347_v37  ;;  %1617 = vmatmul.mubr.f32.gmra.mrb[2].mxu1 %v347_v37 }
  0x2d   : > { %1553 = vmatprep.mubr.msk.f32.mxu0 %vm1830_vm2, %v1829_v3  ;;  %1619 = vmatprep.mubr.msk.f32.mxu1 %vm1830_vm2, %v1829_v3 }
  0x2e   : > { %1567 = vmatprep.subr.mxu0 %v1829_v3  ;;  %1633 = vmatprep.subr.mxu1 %v1829_v3 }
  0x30   : > { %1554 = vmatmul.mubr.f32.gmra.mrb[4].mxu0 %v357_v41  ;;  %1620 = vmatmul.mubr.f32.gmra.mrb[4].mxu1 %v357_v41 }
  0x31   : > { %1558 = vmatprep.mubr.msk.f32.mxu0 %vm1830_vm2, %v1829_v3  ;;  %1624 = vmatprep.mubr.msk.f32.mxu1 %vm1830_vm2, %v1829_v3 }
  0x34   : > { %1559 = vmatmul.mubr.f32.vlgmr.msra.gmra.mrb[0].mxu0 %v1920_v7  ;;  %1625 = vmatmul.mubr.f32.vlgmr.msra.gmra.mrb[0].mxu1 %v1920_v7 }
  0x35   : > { %1561 = vmatprep.mubr.msk.f32.mxu0 %vm1830_vm2, %v1829_v3  ;;  %1568 = vmatpush3.msra.mxu0 %v1955_v26 }
  0x36   : > { %1627 = vmatprep.mubr.msk.f32.mxu1 %vm1830_vm2, %v1829_v3  ;;  %1634 = vmatpush3.msra.mxu1 %v1959_v27 }
  0x37   : > { %1578 = vmatprep.subr.mxu0 %v1829_v3  ;;  %1644 = vmatprep.subr.mxu1 %v1829_v3 }
  0x38   : > { %1562 = vmatmul.mubr.f32.gmra.mrb[2].mxu0 %v1925_v13  ;;  %1628 = vmatmul.mubr.f32.gmra.mrb[2].mxu1 %v1925_v13 }
  0x39   : > { %1564 = vmatprep.mubr.msk.f32.mxu0 %vm1830_vm2, %v1829_v3  ;;  %1630 = vmatprep.mubr.msk.f32.mxu1 %vm1830_vm2, %v1829_v3 }
  0x3c   : > { %1565 = vmatmul.mubr.f32.gmra.mrb[4].mxu0 %v1927_v14  ;;  %1631 = vmatmul.mubr.f32.gmra.mrb[4].mxu1 %v1927_v14 }
  0x3d   : > { %1569 = vmatprep.mubr.msk.f32.mxu0 %vm1830_vm2, %v1829_v3  ;;  %1635 = vmatprep.mubr.msk.f32.mxu1 %vm1830_vm2, %v1829_v3 }
  0x40   : > { %1570 = vmatmul.mubr.f32.vlgmr.msra.gmra.mrb[0].mxu0 %v1932_v18  ;;  %1636 = vmatmul.mubr.f32.vlgmr.msra.gmra.mrb[0].mxu1 %v1932_v18 }
  0x41   : > { %1572 = vmatprep.mubr.msk.f32.mxu0 %vm1830_vm2, %v1829_v3  ;;  %1579 = vmatpush3.msra.mxu0 %v1937_v20 }
  0x42   : > { %1638 = vmatprep.mubr.msk.f32.mxu1 %vm1830_vm2, %v1829_v3  ;;  %1645 = vmatpush3.msra.mxu1 %v1939_v21 }
  0x43   : > { %1589 = vmatprep.subr.mxu0 %v1829_v3  ;;  %1655 = vmatprep.subr.mxu1 %v1829_v3 }
  0x44   : > { %1573 = vmatmul.mubr.f32.gmra.mrb[2].mxu0 %v1942_v22  ;;  %1639 = vmatmul.mubr.f32.gmra.mrb[2].mxu1 %v1942_v22 }
  0x45   : > { %1575 = vmatprep.mubr.msk.f32.mxu0 %vm1830_vm2, %v1829_v3  ;;  %1641 = vmatprep.mubr.msk.f32.mxu1 %vm1830_vm2, %v1829_v3 }
  0x48   : > { %1576 = vmatmul.mubr.f32.gmra.mrb[4].mxu0 %v1945_v23  ;;  %1642 = vmatmul.mubr.f32.gmra.mrb[4].mxu1 %v1945_v23 }
  0x49   : > { %1580 = vmatprep.mubr.msk.f32.mxu0 %vm1830_vm2, %v1829_v3  ;;  %1646 = vmatprep.mubr.msk.f32.mxu1 %vm1830_vm2, %v1829_v3 }
  0x4c   : > { %1581 = vmatmul.mubr.f32.vlgmr.msra.gmra.mrb[0].mxu0 %v1948_v24  ;;  %1647 = vmatmul.mubr.f32.vlgmr.msra.gmra.mrb[0].mxu1 %v1948_v24 }
  0x4d   : > { %1583 = vmatprep.mubr.msk.f32.mxu0 %vm1830_vm2, %v1829_v3  ;;  %1590 = vmatpush3.msra.mxu0 %v366_v31 }
  0x4e   : > { %1649 = vmatprep.mubr.msk.f32.mxu1 %vm1830_vm2, %v1829_v3  ;;  %1656 = vmatpush3.msra.mxu1 %v909_v32 }
  0x4f   : > { %1600 = vmatprep.subr.mxu0 %v1829_v3  ;;  %1666 = vmatprep.subr.mxu1 %v1829_v3 }
  0x50   : > { %1584 = vmatmul.mubr.f32.gmra.mrb[2].mxu0 %v1962_v28  ;;  %1650 = vmatmul.mubr.f32.gmra.mrb[2].mxu1 %v1962_v28 }
  0x51   : > { %1586 = vmatprep.mubr.msk.f32.mxu0 %vm1830_vm2, %v1829_v3  ;;  %1652 = vmatprep.mubr.msk.f32.mxu1 %vm1830_vm2, %v1829_v3 }
  0x54   : > { %1587 = vmatmul.mubr.f32.gmra.mrb[4].mxu0 %v1969_v30  ;;  %1653 = vmatmul.mubr.f32.gmra.mrb[4].mxu1 %v1969_v30 }
  0x55   : > { %1591 = vmatprep.mubr.msk.f32.mxu0 %vm1830_vm2, %v1829_v3  ;;  %1657 = vmatprep.mubr.msk.f32.mxu1 %vm1830_vm2, %v1829_v3 }
  0x58   : > { %1592 = vmatmul.mubr.f32.vlgmr.msra.gmra.mrb[0].mxu0 %v1920_v7  ;;  %1658 = vmatmul.mubr.f32.vlgmr.msra.gmra.mrb[0].mxu1 %v1920_v7 }
  0x59   : > { %1594 = vmatprep.mubr.msk.f32.mxu0 %vm1830_vm2, %v1829_v3  ;;  %1601 = vmatpush3.msra.mxu0 %v1937_v20 }
  0x5a   : > { %1660 = vmatprep.mubr.msk.f32.mxu1 %vm1830_vm2, %v1829_v3  ;;  %1667 = vmatpush3.msra.mxu1 %v1939_v21 }
  0x5c   : > { %1595 = vmatmul.mubr.f32.gmra.mrb[2].mxu0 %v1925_v13  ;;  %1661 = vmatmul.mubr.f32.gmra.mrb[2].mxu1 %v1925_v13 }
  0x5d   : > { %1597 = vmatprep.mubr.msk.f32.mxu0 %vm1830_vm2, %v1829_v3  ;;  %1663 = vmatprep.mubr.msk.f32.mxu1 %vm1830_vm2, %v1829_v3 }
  0x60   : > { %1598 = vmatmul.mubr.f32.gmra.mrb[4].mxu0 %v1927_v14  ;;  %1664 = vmatmul.mubr.f32.gmra.mrb[4].mxu1 %v1927_v14 }
  0x61   : > { %1602 = vmatprep.mubr.msk.f32.mxu0 %vm1830_vm2, %v1829_v3  ;;  %1668 = vmatprep.mubr.msk.f32.mxu1 %vm1830_vm2, %v1829_v3 }
  0x64   : > { %1603 = vmatmul.mubr.f32.vlgmr.msra.gmra.mrb[0].mxu0 %v1920_v7  ;;  %1669 = vmatmul.mubr.f32.vlgmr.msra.gmra.mrb[0].mxu1 %v1920_v7 }
  0x65   : > { %1605 = vmatprep.mubr.msk.f32.mxu0 %vm1830_vm2, %v1829_v3  ;;  %1671 = vmatprep.mubr.msk.f32.mxu1 %vm1830_vm2, %v1829_v3 }
  0x68   : > { %1606 = vmatmul.mubr.f32.gmra.mrb[2].mxu0 %v1925_v13  ;;  %1672 = vmatmul.mubr.f32.gmra.mrb[2].mxu1 %v1925_v13 }
  0x69   : > { %1608 = vmatprep.mubr.msk.f32.mxu0 %vm1830_vm2, %v1829_v3  ;;  %1674 = vmatprep.mubr.msk.f32.mxu1 %vm1830_vm2, %v1829_v3 }
  0x6c   : > { %1609 = vmatmul.mubr.f32.gmra.mrb[4].mxu0 %v1927_v14  ;;  %1675 = vmatmul.mubr.f32.gmra.mrb[4].mxu1 %v1927_v14 }
  0x9f   : > { %v241_v42 = vpop.permute.xlu0 %240 }
  0xa0   : > { %v251_v58 = vpop.permute.xlu1 %250 }
  0xa4   : > { %v246_v49 = vpop.permute.xlu0 %245 }
 0x137   : > { %v783_v43 = vpop.f32.mrb[0].mxu0  ;;  %v1326_v44 = vpop.f32.mrb[0].mxu1 }
 0x138   : > { %v1677_v45 = vadd.f32 %v783_v43, %v241_v42  ;;  %v1680_v46 = vadd.f32 %v1326_v44, %v241_v42  ;;  %v1604_v47 = vpop.f32.mrb[1].mxu0  ;;  %v1670_v48 = vpop.f32.mrb[1].mxu1 }
 0x13a   : > { %v799_v50 = vmax.f32 %v1677_v45, 0.6381  ;;  %v1342_v51 = vmax.f32 %v1680_v46, 0.6381 }
 0x13b   : > { %v789_v52 = vpop.f32.mrb[2].mxu0  ;;  %v1332_v53 = vpop.f32.mrb[2].mxu1 }
 0x13c   : > { %802 = vst [vmem:[%s228_s27] sm:$0xff] %v799_v50  ;;  %1491 = vst [vmem:[%s228_s27 + $0x18] sm:$0xff] %v1342_v51  ;;  %v1678_v54 = vadd.f32 %v789_v52, %v246_v49  ;;  %v1681_v55 = vadd.f32 %v1332_v53, %v246_v49  ;;  %v1607_v56 = vpop.f32.mrb[3].mxu0  ;;  %v1673_v57 = vpop.f32.mrb[3].mxu1 }
 0x13e   : > { %v800_v59 = vmax.f32 %v1678_v54, 0.6381  ;;  %v1343_v60 = vmax.f32 %v1681_v55, 0.6381  ;;  %1355 = sbr.rel (!%p1887_p6) target bundleno = 333 (0x14d), region = 77 }
 0x13f   : > { %v795_v61 = vpop.f32.mrb[4].mxu0  ;;  %v1338_v62 = vpop.f32.mrb[4].mxu1 }
 0x140   : > { %803 = vst [vmem:[%s228_s27 + $0x8] sm:$0xff] %v800_v59  ;;  %1492 = vst [vmem:[%s228_s27 + $0x20] sm:$0xff] %v1343_v60  ;;  %v1679_v63 = vadd.f32 %v795_v61, %v251_v58  ;;  %v1682_v0 = vadd.f32 %v1338_v62, %v251_v58  ;;  %v1610_v1 = vpop.f32.mrb[5].mxu0  ;;  %v1676_v2 = vpop.f32.mrb[5].mxu1 }
 0x142   : > { %v801_v3 = vmax.f32 %v1679_v63, 0.6381  ;;  %v1344_v4 = vmax.f32 %v1682_v0, 0.6381 }
 0x143   : > { %v1398_v5 = vld [vmem:[%s228_s27] sm:$0xff] (%p1887_p6)  ;;  %v1404_v8 = vld [vmem:[%s228_s27 + $0x18] sm:$0xff] (%p1887_p6) }
 0x144   : > { %804 = vst [vmem:[%s228_s27 + $0x10] sm:$0x1] %v801_v3  ;;  %1493 = vst [vmem:[%s228_s27 + $0x28] sm:$0x1] %v1344_v4 }
 0x145   : > { %1399 = vst [vmem:[%s1360_s30] sm:$0xff] %v1398_v5  ;;  %1405 = vst [vmem:[%s1360_s30 + $0x30] sm:$0xff] %v1404_v8 }
 0x147   : > { %v1400_v6 = vld [vmem:[%s228_s27 + $0x8] sm:$0xff]  ;;  %v1406_v9 = vld [vmem:[%s228_s27 + $0x20] sm:$0xff] }
 0x148   : > { %1401 = vst [vmem:[%s1360_s30 + $0x10] sm:$0xff] %v1400_v6  ;;  %1407 = vst [vmem:[%s1360_s30 + $0x40] sm:$0xff] %v1406_v9 }
 0x14b   : > { %v1402_v7 = vld [vmem:[%s228_s27 + $0x10] sm:$0xff]  ;;  %v1408_v10 = vld [vmem:[%s228_s27 + $0x28] sm:$0xff] }
 0x14c   : > { %1403 = vst [vmem:[%s1360_s30 + $0x20] sm:$0xff] %v1402_v7  ;;  %1409 = vst [vmem:[%s1360_s30 + $0x50] sm:$0xff] %v1408_v10 }
 0x14d PF: > { %s13_s16 = sadd.s32 1, %s1827_s16   ;;  %s2127_s12 = smov %s1815_s13 }
 0x14e   : > { %p10_p11 = scmp.ge.s32.totalorder %s13_s16, 4   ;;  %s2128_s13 = smov %s1892_s22 }
 0x14f   : > { %s2129_s14 = smov %s1823_s15  ;;  %s2130_s15 = smov %s2132_s17 }
 0x150   :  { %12 = sbr.rel (!%p10_p11) target bundleno = 3 (0x3), region = 148 }

</bundles_post_ra>
